<compile_context>
chip_gen: v5e
topology: v5e:2x2
jax: 0.10.0
libtpu: 0.0.40
codegen_flags: <defaults>
</compile_context>

<pallas_src>
import jax
import jax.numpy as jnp
from jax.experimental import pallas as pl
from jax.experimental.pallas import tpu as pltpu


# ----------------------------------------------------------------------------
# Pallas kernels
# ----------------------------------------------------------------------------
def _fused_mlp_kernel(x_ref, w_ref, b_ref, o_ref):
    # x_ref: (1, S, D)  w_ref: (D, T)  b_ref: (1, T)  o_ref: (1, S, T)
    h = jnp.dot(x_ref[0], w_ref[...], preferred_element_type=jnp.float32) + b_ref[...]
    o_ref[0] = jnp.where(h >= 0, h, 0.1 * h).astype(o_ref.dtype)  # LeakyReLU(0.1)


def fused_mlp(x, w_all, b_all):
    """x: [B,S,D], w_all: [D,T], b_all: [1,T] -> [B,S,T] (all 12 MLPs in one call)."""
    B, S, D = x.shape
    T = w_all.shape[1]
    return pl.pallas_call(
        _fused_mlp_kernel,
        out_shape=jax.ShapeDtypeStruct((B, S, T), jnp.float32),
        grid=(B,),
        in_specs=[
            pl.BlockSpec((1, S, D), lambda i: (i, 0, 0)),
            pl.BlockSpec((D, T), lambda i: (0, 0)),
            pl.BlockSpec((1, T), lambda i: (0, 0)),
        ],
        out_specs=pl.BlockSpec((1, S, T), lambda i: (i, 0, 0)),
        compiler_params=pltpu.CompilerParams(dimension_semantics=("parallel",)),
    )(x, w_all, b_all)


def _fused_biaffine_kernel(lsel_ref, rsel_ref, sym_ref, l_ref, r_ref, w_ref, o_ref):
    # l_ref/r_ref: (1, 1, S, Td)   w_ref: (1, Td, Td)   o_ref: (1, 1, S, S)
    L = l_ref[0, 0]                                            # (S, Td)
    R = r_ref[0, 0]                                            # (S, Td)
    W = w_ref[0]                                               # (Td, Td)
    t = jnp.dot(L, W, preferred_element_type=jnp.float32)      # (S, Td)
    s = jax.lax.dot_general(                                   # (S, S): sum_j t[x,j] R[y,j]
        t, R, (((1,), (1,)), ((), ())), preferred_element_type=jnp.float32)

    # Optional symmetrization: triu() + triu(1).T  ==  where(row <= col, s, s^T)
    S_ = s.shape[0]
    row = jax.lax.broadcasted_iota(jnp.int32, (S_, S_), 0)
    col = jax.lax.broadcasted_iota(jnp.int32, (S_, S_), 1)
    sym = sym_ref[pl.program_id(1)]
    s = jnp.where((sym == 0) | (row <= col), s, s.T)
    o_ref[0, 0] = s.astype(o_ref.dtype)


def fused_biaffine(h4, w_stack, l_sel, r_sel, sym):
    """h4: [B, n_slots, S, Td] stacked MLP outputs; w_stack: [O, Td, Td];
    l_sel/r_sel/sym: int32 [O].  Returns packed scores [B, O, S, S]."""
    B, _, S, Td = h4.shape
    O = w_stack.shape[0]
    return pl.pallas_call(
        _fused_biaffine_kernel,
        out_shape=jax.ShapeDtypeStruct((B, O, S, S), jnp.float32),
        grid_spec=pltpu.PrefetchScalarGridSpec(
            num_scalar_prefetch=3,
            grid=(B, O),
            in_specs=[
                pl.BlockSpec((1, 1, S, Td), lambda b, o, ls, rs, sy: (b, ls[o], 0, 0)),
                pl.BlockSpec((1, 1, S, Td), lambda b, o, ls, rs, sy: (b, rs[o], 0, 0)),
                pl.BlockSpec((1, Td, Td), lambda b, o, ls, rs, sy: (o, 0, 0)),
            ],
            out_specs=pl.BlockSpec((1, 1, S, S), lambda b, o, ls, rs, sy: (b, o, 0, 0)),
        ),
        compiler_params=pltpu.CompilerParams(
            dimension_semantics=("parallel", "parallel")),
    )(l_sel, r_sel, sym, h4, h4, w_stack)


# ----------------------------------------------------------------------------
# Module forward (wrapper; parameter packing / permutes are plain-JAX glue)
# ----------------------------------------------------------------------------
_MLP_SLOTS = ("sl", "sr", "ph", "rh", "pt", "rt",
              "slf", "srf", "phl", "rhl", "ptl", "rtl")
_HEADS = (  # (biaffine weight key, left MLP slot, right MLP slot, symmetrize)
    ("span_W", 0, 1, True),
    ("h2h_W", 2, 3, False),
    ("t2t_W", 4, 5, False),
    ("frame_W", 6, 7, False),
    ("h2h_label_W", 8, 9, False),
    ("t2t_label_W", 10, 11, False),
)


def first_order_scorer(x, params):
    B, S, D = x.shape
    dims = [params[f"{n}_w"].shape[1] for n in _MLP_SLOTS]
    Td = max(dims)  # zero-pad biaffine_dim / biaffine_label_dim to a common width

    # ---- fused MLP parameters -------------------------------------------------
    w_cols, b_cols = [], []
    for n, d in zip(_MLP_SLOTS, dims):
        w = params[f"{n}_w"]
        b = params[f"{n}_b"].reshape(-1)
        if d < Td:
            w = jnp.pad(w, ((0, 0), (0, Td - d)))
            b = jnp.pad(b, (0, Td - d))
        w_cols.append(w)
        b_cols.append(b)
    w_all = jnp.concatenate(w_cols, axis=1)            # (D, 12*Td)
    b_all = jnp.concatenate(b_cols)[None, :]           # (1, 12*Td)

    h = fused_mlp(x, w_all, b_all)                     # (B, S, 12*Td) lane-dense
    # layout plumbing: slot-major slabs (B, 12, S, Td) so biaffine blocks are
    # full in the last two dims (always-legal BlockSpecs, no masked loads).
    h4 = jnp.transpose(h.reshape(B, S, len(_MLP_SLOTS), Td), (0, 2, 1, 3))

    # ---- fused biaffine: stack every output channel of every head --------------
    w_stack, l_sel, r_sel, sym, sizes = [], [], [], [], []
    for key, li, ri, do_sym in _HEADS:
        W = params[key]                                # (n_out, d, d)
        n_out, d = W.shape[0], W.shape[1]
        if d < Td:
            W = jnp.pad(W, ((0, 0), (0, Td - d), (0, Td - d)))
        w_stack.append(W)
        l_sel += [li] * n_out
        r_sel += [ri] * n_out
        sym += [1 if do_sym else 0] * n_out
        sizes.append(n_out)
    w_stack = jnp.concatenate(w_stack, axis=0)         # (O_total, Td, Td)
    l_sel = jnp.asarray(l_sel, jnp.int32)
    r_sel = jnp.asarray(r_sel, jnp.int32)
    sym = jnp.asarray(sym, jnp.int32)

    scores = fused_biaffine(h4, w_stack, l_sel, r_sel, sym)   # (B, O_total, S, S)

    # ---- unpack heads (channel squeeze / permute as in the torch forward) ------
    offs = [0]
    for n in sizes:
        offs.append(offs[-1] + n)

    def head(i):
        return scores[:, offs[i]:offs[i + 1]]

    def squeeze_or_permute(s):
        return s[:, 0] if s.shape[1] == 1 else jnp.transpose(s, (0, 2, 3, 1))

    span = squeeze_or_permute(head(0))
    h2h = squeeze_or_permute(head(1))
    t2t = squeeze_or_permute(head(2))
    frames = jnp.transpose(head(3), (0, 2, 3, 1))
    h2h_label = jnp.transpose(head(4), (0, 2, 3, 1))
    t2t_label = jnp.transpose(head(5), (0, 2, 3, 1))
    return span, h2h, t2t, frames, h2h_label, t2t_label


# ----------------------------------------------------------------------------
# Pure-JAX reference (for correctness check)
# ----------------------------------------------------------------------------
def _ref_mlp(x, w, b):
    return jax.nn.leaky_relu(x @ w + b.reshape(-1), negative_slope=0.1)


def _ref_biaffine(l, r, W):
    return jnp.einsum("bxi,oij,byj->boxy", l, W, r)


def _ref_symmetrize(s):
    S = s.shape[-1]
    idx = jnp.arange(S)
    mask = (idx[:, None] <= idx[None, :])
    return jnp.where(mask, s, jnp.swapaxes(s, -1, -2))


def _ref_forward(x, p):
    m = {n: _ref_mlp(x, p[f"{n}_w"], p[f"{n}_b"]) for n in _MLP_SLOTS}

    def sq(s):
        return s[:, 0] if s.shape[1] == 1 else jnp.transpose(s, (0, 2, 3, 1))

    span = sq(_ref_symmetrize(_ref_biaffine(m["sl"], m["sr"], p["span_W"])))
    h2h = sq(_ref_biaffine(m["ph"], m["rh"], p["h2h_W"]))
    t2t = sq(_ref_biaffine(m["pt"], m["rt"], p["t2t_W"]))
    frames = jnp.transpose(_ref_biaffine(m["slf"], m["srf"], p["frame_W"]), (0, 2, 3, 1))
    h2h_label = jnp.transpose(_ref_biaffine(m["phl"], m["rhl"], p["h2h_label_W"]), (0, 2, 3, 1))
    t2t_label = jnp.transpose(_ref_biaffine(m["ptl"], m["rtl"], p["t2t_label_W"]), (0, 2, 3, 1))
    return span, h2h, t2t, frames, h2h_label, t2t_label


# ----------------------------------------------------------------------------
# Main
# ----------------------------------------------------------------------------
if __name__ == "__main__":
    B, S, D = 2, 8, 32                 # batch, seq_len, input_dim
    biaffine_dim = 16                  # conf.biaffine_dim
    biaffine_label_dim = 16            # conf.biaffine_label_dim
    span_n_out, arc_n_out = 1, 1       # conf.span_n_out, conf.arc_n_out
    num_frame, num_role = 4, 6         # n_span_labels

    key = jax.random.PRNGKey(0)
    keys = iter(jax.random.split(key, 32))

    def nrm(shape, scale):
        return jax.random.normal(next(keys), shape, dtype=jnp.float32) * scale

    params = {}
    for n in ("sl", "sr", "ph", "rh", "pt", "rt"):
        params[f"{n}_w"] = nrm((D, biaffine_dim), 1.0 / jnp.sqrt(D))
        params[f"{n}_b"] = nrm((biaffine_dim,), 0.02)
    for n in ("slf", "srf", "phl", "rhl", "ptl", "rtl"):
        params[f"{n}_w"] = nrm((D, biaffine_label_dim), 1.0 / jnp.sqrt(D))
        params[f"{n}_b"] = nrm((biaffine_label_dim,), 0.02)
    params["span_W"] = nrm((span_n_out, biaffine_dim, biaffine_dim), 1.0 / biaffine_dim)
    params["h2h_W"] = nrm((arc_n_out, biaffine_dim, biaffine_dim), 1.0 / biaffine_dim)
    params["t2t_W"] = nrm((arc_n_out, biaffine_dim, biaffine_dim), 1.0 / biaffine_dim)
    params["frame_W"] = nrm((num_frame, biaffine_label_dim, biaffine_label_dim),
                            1.0 / biaffine_label_dim)
    params["h2h_label_W"] = nrm((num_role, biaffine_label_dim, biaffine_label_dim),
                                1.0 / biaffine_label_dim)
    params["t2t_label_W"] = nrm((num_role, biaffine_label_dim, biaffine_label_dim),
                                1.0 / biaffine_label_dim)

    x = nrm((B, S, D), 1.0)

    outs = jax.block_until_ready(jax.jit(first_order_scorer)(x, params))
    refs = jax.block_until_ready(_ref_forward(x, params))

    names = ("span", "h2h", "t2t", "frames", "h2h_label", "t2t_label")
    expected = {
        "span": (B, S, S),
        "h2h": (B, S, S),
        "t2t": (B, S, S),
        "frames": (B, S, S, num_frame),
        "h2h_label": (B, S, S, num_role),
        "t2t_label": (B, S, S, num_role),
    }
    for name, o, r in zip(names, outs, refs):
        assert o.shape == expected[name], (name, o.shape, expected[name])
        assert o.shape == r.shape, (name, o.shape, r.shape)
        err = float(jnp.max(jnp.abs(o - r)))
        if err > 1e-3:
            raise AssertionError(f"{name}: max abs err {err}")

    print("KERNEL_OK")
</pallas_src>

<mosaic_0001>
module attributes {stable_mosaic.version = 11 : i64} {
  func.func @_fused_mlp_kernel(%arg0: i32, %arg1: memref<1x8x32xf32, #tpu.memory_space<vmem>>, %arg2: memref<32x192xf32, #tpu.memory_space<vmem>>, %arg3: memref<1x192xf32, #tpu.memory_space<vmem>>, %arg4: memref<1x8x192xf32, #tpu.memory_space<vmem>>) attributes {dimension_semantics = [#tpu.dimension_semantics<parallel>], iteration_bounds = array<i64: 2>, scalar_prefetch = 0 : i64, scratch_operands = 0 : i64, tpu.core_type = #tpu.core_type<tc>, window_params = [{transform_indices = @transform_0, window_bounds = array<i64: 1, 8, 32>}, {pipeline_mode = #tpu.pipeline_mode<synchronous>, transform_indices = @transform_1, window_bounds = array<i64: 32, 192>}, {pipeline_mode = #tpu.pipeline_mode<synchronous>, transform_indices = @transform_2, window_bounds = array<i64: 1, 192>}, {transform_indices = @transform_3, window_bounds = array<i64: 1, 8, 192>}]} {
    %c0 = arith.constant 0 : index
    %c0_0 = arith.constant 0 : index
    %c0_1 = arith.constant 0 : index
    %0 = vector.load %arg1[%c0, %c0_0, %c0_1] : memref<1x8x32xf32, #tpu.memory_space<vmem>>, vector<1x8x32xf32>
    %1 = vector.shape_cast %0 : vector<1x8x32xf32> to vector<8x32xf32>
    %c0_2 = arith.constant 0 : index
    %c0_3 = arith.constant 0 : index
    %2 = vector.load %arg2[%c0_2, %c0_3] : memref<32x192xf32, #tpu.memory_space<vmem>>, vector<32x192xf32>
    %cst = arith.constant dense<0.000000e+00> : vector<8x192xf32>
    %3 = tpu.matmul %1, %2, %cst {dimension_numbers = #tpu.dot_dimension_numbers<[1], [0], [0], [1], [0, 0, 1, 1], [], []>} : vector<8x32xf32>, vector<32x192xf32>, vector<8x192xf32> -> vector<8x192xf32>
    %c0_4 = arith.constant 0 : index
    %c0_5 = arith.constant 0 : index
    %4 = vector.load %arg3[%c0_4, %c0_5] : memref<1x192xf32, #tpu.memory_space<vmem>>, vector<1x192xf32>
    %5 = vector.broadcast %4 : vector<1x192xf32> to vector<8x192xf32>
    %6 = arith.addf %3, %5 : vector<8x192xf32>
    %cst_6 = arith.constant 0.000000e+00 : f32
    %7 = vector.broadcast %cst_6 : f32 to vector<8x192xf32>
    %8 = arith.cmpf oge, %6, %7 : vector<8x192xf32>
    %cst_7 = arith.constant 1.000000e-01 : f32
    %9 = vector.broadcast %cst_7 : f32 to vector<8x192xf32>
    %10 = arith.mulf %9, %6 : vector<8x192xf32>
    %11 = arith.select %8, %6, %10 : vector<8x192xi1>, vector<8x192xf32>
    %c0_8 = arith.constant 0 : index
    %c0_9 = arith.constant 0 : index
    %c0_10 = arith.constant 0 : index
    %12 = vector.load %arg4[%c0_8, %c0_9, %c0_10] : memref<1x8x192xf32, #tpu.memory_space<vmem>>, vector<1x8x192xf32>
    %13 = vector.shape_cast %12 : vector<1x8x192xf32> to vector<8x192xf32>
    %14 = vector.shape_cast %11 : vector<8x192xf32> to vector<1x8x192xf32>
    tpu.vector_store %arg4[%c0_8, %c0_9, %c0_10], %14 {strides = array<i32>} : memref<1x8x192xf32, #tpu.memory_space<vmem>>, vector<1x8x192xf32>,
    return
  }
  func.func @transform_0(%arg0: i32) -> (i32, i32, i32) {
    %c0_i32 = arith.constant 0 : i32
    %c0_i32_0 = arith.constant 0 : i32
    %c0_i32_1 = arith.constant 0 : i32
    return %arg0, %c0_i32, %c0_i32_0 : i32, i32, i32
  }
  func.func @transform_1(%arg0: i32) -> (i32, i32) {
    %c0_i32 = arith.constant 0 : i32
    %c0_i32_0 = arith.constant 0 : i32
    %c0_i32_1 = arith.constant 0 : i32
    return %c0_i32, %c0_i32_0 : i32, i32
  }
  func.func @transform_2(%arg0: i32) -> (i32, i32) {
    %c0_i32 = arith.constant 0 : i32
    %c0_i32_0 = arith.constant 0 : i32
    %c0_i32_1 = arith.constant 0 : i32
    return %c0_i32, %c0_i32_0 : i32, i32
  }
  func.func @transform_3(%arg0: i32) -> (i32, i32, i32) {
    %c0_i32 = arith.constant 0 : i32
    %c0_i32_0 = arith.constant 0 : i32
    %c0_i32_1 = arith.constant 0 : i32
    return %arg0, %c0_i32, %c0_i32_0 : i32, i32, i32
  }
}

module attributes {stable_mosaic.version = 11 : i64} {
  func.func @_fused_biaffine_kernel(%arg0: i32, %arg1: i32, %arg2: memref<19xi32, #tpu.memory_space<smem>>, %arg3: memref<19xi32, #tpu.memory_space<smem>>, %arg4: memref<19xi32, #tpu.memory_space<smem>>, %arg5: memref<1x1x8x16xf32, #tpu.memory_space<vmem>>, %arg6: memref<1x1x8x16xf32, #tpu.memory_space<vmem>>, %arg7: memref<1x16x16xf32, #tpu.memory_space<vmem>>, %arg8: memref<1x1x8x8xf32, #tpu.memory_space<vmem>>) attributes {dimension_semantics = [#tpu.dimension_semantics<parallel>, #tpu.dimension_semantics<parallel>], iteration_bounds = array<i64: 2, 19>, scalar_prefetch = 3 : i64, scratch_operands = 0 : i64, tpu.core_type = #tpu.core_type<tc>, window_params = [{transform_indices = @transform_0, window_bounds = array<i64: 1, 1, 8, 16>}, {transform_indices = @transform_1, window_bounds = array<i64: 1, 1, 8, 16>}, {transform_indices = @transform_2, window_bounds = array<i64: 1, 16, 16>}, {transform_indices = @transform_3, window_bounds = array<i64: 1, 1, 8, 8>}]} {
    %c0 = arith.constant 0 : index
    %c0_0 = arith.constant 0 : index
    %c0_1 = arith.constant 0 : index
    %c0_2 = arith.constant 0 : index
    %0 = vector.load %arg5[%c0, %c0_0, %c0_1, %c0_2] : memref<1x1x8x16xf32, #tpu.memory_space<vmem>>, vector<1x1x8x16xf32>
    %1 = vector.shape_cast %0 : vector<1x1x8x16xf32> to vector<8x16xf32>
    %c0_3 = arith.constant 0 : index
    %c0_4 = arith.constant 0 : index
    %c0_5 = arith.constant 0 : index
    %c0_6 = arith.constant 0 : index
    %2 = vector.load %arg6[%c0_3, %c0_4, %c0_5, %c0_6] : memref<1x1x8x16xf32, #tpu.memory_space<vmem>>, vector<1x1x8x16xf32>
    %3 = vector.shape_cast %2 : vector<1x1x8x16xf32> to vector<8x16xf32>
    %c0_7 = arith.constant 0 : index
    %c0_8 = arith.constant 0 : index
    %c0_9 = arith.constant 0 : index
    %4 = vector.load %arg7[%c0_7, %c0_8, %c0_9] : memref<1x16x16xf32, #tpu.memory_space<vmem>>, vector<1x16x16xf32>
    %5 = vector.shape_cast %4 : vector<1x16x16xf32> to vector<16x16xf32>
    %cst = arith.constant dense<0.000000e+00> : vector<8x16xf32>
    %6 = tpu.matmul %1, %5, %cst {dimension_numbers = #tpu.dot_dimension_numbers<[1], [0], [0], [1], [0, 0, 1, 1], [], []>} : vector<8x16xf32>, vector<16x16xf32>, vector<8x16xf32> -> vector<8x16xf32>
    %cst_10 = arith.constant dense<0.000000e+00> : vector<8x8xf32>
    %7 = tpu.matmul %6, %3, %cst_10 {dimension_numbers = #tpu.dot_dimension_numbers<[1], [1], [0], [0], [0, 0, 1, 0], [], []>} : vector<8x16xf32>, vector<8x16xf32>, vector<8x8xf32> -> vector<8x8xf32>
    %8 = tpu.iota {dimensions = array<i32: 0>} : vector<8x8xi32>
    %9 = tpu.iota {dimensions = array<i32: 1>} : vector<8x8xi32>
    %10 = arith.index_cast %arg1 : i32 to index
    %11 = memref.load %arg4[%10] : memref<19xi32, #tpu.memory_space<smem>>
    %c0_i32 = arith.constant 0 : i32
    %12 = arith.cmpi eq, %11, %c0_i32 : i32
    %13 = arith.cmpi sle, %8, %9 : vector<8x8xi32>
    %14 = vector.broadcast %12 : i1 to vector<8x8xi1>
    %15 = arith.ori %14, %13 : vector<8x8xi1>
    %16 = tpu.transpose %7, [1, 0] : vector<8x8xf32> -> vector<8x8xf32>
    %17 = arith.select %15, %7, %16 : vector<8x8xi1>, vector<8x8xf32>
    %c0_11 = arith.constant 0 : index
    %c0_12 = arith.constant 0 : index
    %c0_13 = arith.constant 0 : index
    %c0_14 = arith.constant 0 : index
    %18 = vector.load %arg8[%c0_11, %c0_12, %c0_13, %c0_14] : memref<1x1x8x8xf32, #tpu.memory_space<vmem>>, vector<1x1x8x8xf32>
    %19 = vector.shape_cast %18 : vector<1x1x8x8xf32> to vector<8x8xf32>
    %20 = vector.shape_cast %17 : vector<8x8xf32> to vector<1x1x8x8xf32>
    tpu.vector_store %arg8[%c0_11, %c0_12, %c0_13, %c0_14], %20 {strides = array<i32>} : memref<1x1x8x8xf32, #tpu.memory_space<vmem>>, vector<1x1x8x8xf32>,
    return
  }
  func.func @transform_0(%arg0: i32, %arg1: i32, %arg2: memref<19xi32, #tpu.memory_space<smem>>, %arg3: memref<19xi32, #tpu.memory_space<smem>>, %arg4: memref<19xi32, #tpu.memory_space<smem>>) -> (i32, i32, i32, i32) {
    %0 = arith.index_cast %arg1 : i32 to index
    %1 = memref.load %arg2[%0] : memref<19xi32, #tpu.memory_space<smem>>
    %c0_i32 = arith.constant 0 : i32
    %c0_i32_0 = arith.constant 0 : i32
    %c0_i32_1 = arith.constant 0 : i32
    return %arg0, %1, %c0_i32, %c0_i32_0 : i32, i32, i32, i32
  }
  func.func @transform_1(%arg0: i32, %arg1: i32, %arg2: memref<19xi32, #tpu.memory_space<smem>>, %arg3: memref<19xi32, #tpu.memory_space<smem>>, %arg4: memref<19xi32, #tpu.memory_space<smem>>) -> (i32, i32, i32, i32) {
    %0 = arith.index_cast %arg1 : i32 to index
    %1 = memref.load %arg3[%0] : memref<19xi32, #tpu.memory_space<smem>>
    %c0_i32 = arith.constant 0 : i32
    %c0_i32_0 = arith.constant 0 : i32
    %c0_i32_1 = arith.constant 0 : i32
    return %arg0, %1, %c0_i32, %c0_i32_0 : i32, i32, i32, i32
  }
  func.func @transform_2(%arg0: i32, %arg1: i32, %arg2: memref<19xi32, #tpu.memory_space<smem>>, %arg3: memref<19xi32, #tpu.memory_space<smem>>, %arg4: memref<19xi32, #tpu.memory_space<smem>>) -> (i32, i32, i32) {
    %c0_i32 = arith.constant 0 : i32
    %c0_i32_0 = arith.constant 0 : i32
    %c0_i32_1 = arith.constant 0 : i32
    return %arg1, %c0_i32, %c0_i32_0 : i32, i32, i32
  }
  func.func @transform_3(%arg0: i32, %arg1: i32, %arg2: memref<19xi32, #tpu.memory_space<smem>>, %arg3: memref<19xi32, #tpu.memory_space<smem>>, %arg4: memref<19xi32, #tpu.memory_space<smem>>) -> (i32, i32, i32, i32) {
    %c0_i32 = arith.constant 0 : i32
    %c0_i32_0 = arith.constant 0 : i32
    %c0_i32_1 = arith.constant 0 : i32
    return %arg0, %arg1, %c0_i32, %c0_i32_0 : i32, i32, i32, i32
  }
}

</mosaic_0001>

<bundles_post_ra>
// kernel: first_order_scorer.2
= control target key start
LH: loop header
LB: loop body
LE: loop exit
PB: predicated region body
PF: predicated region fallthrough
CT: control target
= control target key end

     0   :  { %s340_s12 = smov 0   ;;  %s384_s0 = inlined_call_operand.vmem [shape: f32[2,8,32], index: 0, kind: input, shape index: {}]   ;;  %s385_s1 = inlined_call_operand.vmem [shape: f32[32,192], index: 1, kind: input, shape index: {}]   ;;  %s386_s2 = inlined_call_operand.vmem [shape: f32[1,192], index: 2, kind: input, shape index: {}]   ;;  %s387_s3 = inlined_call_operand.vmem [shape: f32[2,8,192], index: 3, kind: output, shape index: {}]  }
   0x1 LB: > { %s291_s13 = sadd.s32 4294967295, %s318_s12   ;;  %p295_p0 = scmp.ge.s32.totalorder %s318_s12, 1  ;;  %s318_s12 = sphi %s340_s12, %s13_s12  }
   0x2   : > { %p136_p1 = scmp.lt.s32.totalorder %s318_s12, 3 }
   0x4   : > { %p137_p2 = pnand %p295_p0, %p136_p1 }
   0x5   : > { %p159_p3 = scmp.lt.s32.totalorder (!%p137_p2), %s291_s13, 1 }
   0x6   : > { %140 = sbr.rel (%p137_p2) target bundleno = 152 (0x98), region = 32 }
   0xb   : > { %v175_v0 = vld [vmem:[%s385_s1 + $0x30] sm:$0xff]  ;;  %v176_v1 = vld [vmem:[%s385_s1 + $0x38] sm:$0xff]  ;;  %v173_v2 = vld [vmem:[%s385_s1 + $0x20] sm:$0xff]  ;;  %s389_s13 = smov (!%p159_p3, %s291_s13), 1  ;;  %vm183_vm0 = vcmask 261120   ;;  %vm234_vm3 = vcmask 523264  }
   0xc   : > { %199 = vmatpush.msra.mxu0 %v175_v0  ;;  %219 = vmatpush.msra.mxu1 %v176_v1  ;;  %v174_v3 = vld [vmem:[%s385_s1 + $0x28] sm:$0xff]  ;;  %v171_v4 = vld [vmem:[%s385_s1 + $0x10] sm:$0xff]  ;;  %v172_v5 = vld [vmem:[%s385_s1 + $0x18] sm:$0xff]  ;;  %s296_s30 = sshll.u32 %s389_s13, 3  ;;  %s303_s9 = sshll.u32 %s389_s13, 4 }
   0xd   : > { %v169_v6 = vld [vmem:[%s385_s1] sm:$0xff]  ;;  %v170_v7 = vld [vmem:[%s385_s1 + $0x8] sm:$0xff]  ;;  %s162_s6 = scalar_lea.vmem %s384_s0, %s296_s30  ;;  %s167_s14 = scalar_lea.vmem %s387_s3, %s303_s9 }
   0xe   : > { %200 = vmatpush.msra.mxu0 %v173_v2  ;;  %220 = vmatpush.msra.mxu1 %v174_v3  ;;  %v168_v8 = vld [vmem:[%s162_s6] sm:$0xff] }
   0xf   : > { %v177_v9 = vld [vmem:[%s386_s2] sm:$0x3] }
  0x10   : > { %201 = vmatpush.msra.mxu0 %v171_v4  ;;  %221 = vmatpush.msra.mxu1 %v172_v5  ;;  %v179_v10 = vperm.slane %v177_v9, 0  ;;  %v180_v11 = vperm.slane %v177_v9, 1 }
  0x12   : > { %202 = vmatpush.msra.mxu0 %v169_v6  ;;  %222 = vmatpush.msra.mxu1 %v170_v7 }
  0x13   : > { %299 = vmatmul.msk.f32.vlgmr.msra.gmra.mxu0 %vm183_vm0, %v168_v8  ;;  %300 = vmatmul.msk.f32.vlgmr.msra.gmra.mxu1 %vm183_vm0, %v168_v8 }
  0x90   : > { %v204_v12 = vpop.f32.mrf.mxu0  ;;  %v224_v13 = vpop.f32.mrf.mxu1 }
  0x91   : > { %v205_v14 = vadd.f32 %v204_v12, %v179_v10  ;;  %v225_v15 = vadd.f32 %v224_v13, %v180_v11 }
  0x93   : > { %vm227_vm1 = vcmp.ge.f32.partialorder %v205_v14, 0.0  ;;  %v229_v16 = vmul.f32 0.1, %v205_v14  ;;  %vm228_vm2 = vcmp.ge.f32.partialorder %v225_v15, 0.0  ;;  %v230_v17 = vmul.f32 0.1, %v225_v15 }
  0x95   : > { %v231_v18 = vsel %vm227_vm1, %v205_v14, %v229_v16  ;;  %v232_v19 = vsel %vm228_vm2, %v225_v15, %v230_v17 }
  0x96   : > { %233 = vst [vmem:[%s167_s14] sm:$0xff] %v231_v18 }
  0x97   : > { %235 = vst.msk [vmem:[%s167_s14 + $0x8] sm:$0xff] %vm234_vm3, %v232_v19 }
  0x98 PF: > { %s13_s12 = sadd.s32 1, %s318_s12  }
  0x99   : > { %p10_p4 = scmp.ge.s32.totalorder %s13_s12, 4  }
  0x9b   :  { %12 = sbr.rel (!%p10_p4) target bundleno = 1 (0x1), region = 62 }

// kernel: first_order_scorer.3
= control target key start
LH: loop header
LB: loop body
LE: loop exit
PB: predicated region body
PF: predicated region fallthrough
CT: control target
= control target key end

     0   :  { %s644_s27 = smov [#allocation3]   ;;  %s645_s28 = smov [#allocation4]   ;;  %s758_s0 = inlined_call_operand.vmem [shape: s32[19], index: 0, kind: input, shape index: {}]   ;;  %s759_s3 = inlined_call_operand.vmem [shape: f32[2,12,8,16], index: 3, kind: input, shape index: {}, may-alias: {3,4}]   ;;  %s760_s4 = inlined_call_operand.vmem [shape: f32[2,12,8,16], index: 4, kind: input, shape index: {}, may-alias: {3,4}]   ;;  %s761_s5 = inlined_call_operand.vmem [shape: f32[19,16,16], index: 5, kind: input, shape index: {}]   ;;  %s762_s6 = inlined_call_operand.vmem [shape: f32[2,19,8,8], index: 6, kind: output, shape index: {}]   ;;  %s763_s1 = inlined_call_operand.vmem [shape: s32[19], index: 1, kind: input, shape index: {}]   ;;  %s764_s2 = inlined_call_operand.vmem [shape: s32[19], index: 2, kind: input, shape index: {}]  }
   0x1   :  { %s12_s23 = sshll.u32 %s758_s0, 4  ;;  %s17_s26 = sshll.u32 %s763_s1, 4  ;;  %s13_s23 = int_to_ptr.vmem [resolvable:$true] %s12_s23  ;;  %s18_s26 = int_to_ptr.vmem [resolvable:$true] %s17_s26 }
   0x2   :  { %15 = dma.vmem_to_smem %s13_s23, 16, %s644_s27, [#allocation2] }
   0x3   :  { %20 = dma.vmem_to_smem %s18_s26, 16, %s645_s28, [#allocation2] }
   0x4   :  { %s22_s7 = sshll.u32 %s764_s2, 4  ;;  %s646_s8 = smov [#allocation5]   ;;  %s23_s7 = int_to_ptr.vmem [resolvable:$true] %s22_s7 }
   0x5   :  { %25 = dma.vmem_to_smem %s23_s7, 16, %s646_s8, [#allocation2] }
   0x6   :  { %622 = dma.done.wait [#allocation2], 48 }
   0x7   :  { %623 = vsyncadd [#allocation2], 4294967248 }
   0x8   :  { %28 = sfence }
   0x9   :  { %s691_s0 = smov 0   ;;  %s693_s9 = smov 0  }
   0xa   :  { %s695_s1 = smov 0   ;;  %s697_s10 = smov 0  }
   0xb   :  { %s699_s11 = smov 0  }
   0xc LB: > { %s43_s2 = sadd.s32 1, %s634_s1  ;;  %s46_s12 = sadd.s32 1, %s638_s10  ;;  %s642_s11 = sphi %s699_s11, %s34_s11   ;;  %s638_s10 = sphi %s697_s10, %s768_s10   ;;  %s634_s1 = sphi %s695_s1, %s767_s1   ;;  %s630_s9 = sphi %s693_s9, %s766_s9   ;;  %s626_s0 = sphi %s691_s0, %s765_s0  }
   0xd   : > { %p44_p0 = scmp.ge.s32.totalorder %s43_s2, 19  ;;  %p508_p1 = scmp.ge.s32.totalorder %s642_s11, 1 }
   0xe   : > { %p210_p2 = scmp.lt.s32.totalorder %s642_s11, 39 }
   0xf   : > { %s770_s2 = smov (%p44_p0, %s43_s2), 0  ;;  %s772_s12 = smov (!%p44_p0, %s46_s12), %s638_s10 }
  0x10   : > { %p211_p3 = pnand %p508_p1, %p210_p2  ;;  %p48_p4 = scmp.ge.s32.totalorder %s772_s12, 2 }
  0x11   : > { %p256_p5 = scmp.lt.s32.totalorder (!%p211_p3), %s630_s9, 1  ;;  %p275_p6 = scmp.lt.s32.totalorder (!%p211_p3), %s626_s0, 18 }
  0x12   : > { %s774_s12 = smov (%p48_p4, %s772_s12), 0  ;;  %214 = sbr.rel (%p211_p3) target bundleno = 452 (0x1c4), region = 32 }
  0x13   : > { %s255_s13 = sld [smem:[#allocation3 + %s626_s0]] (!%p211_p3) }
  0x14   : > { %s265_s16 = sld [smem:[#allocation4 + %s626_s0]] (!%p211_p3) }
  0x17   : > { %s776_s9 = smov (!%p256_p5, %s630_s9), 1  ;;  %vm292_vm0 = vcmask 130048   ;;  %v342_v6 = vlaneseq  ;;  %vm386_vm4 = vcmask 64512  }
  0x18   : > { %s276_s14 = scalar_select %p275_p6, %s626_s0, 18 }
  0x19   : > { %s521_s15 = smul.u32 19, %s776_s9  ;;  %p258_p7 = scmp.lt.s32.totalorder %s255_s13, 11  ;;  %v343_v7 = vshrl.u32 %v342_v6, 7  ;;  %v345_v8 = vand.u32 127, %v342_v6 }
  0x1a   : > { %s519_s17 = sshll.u32 %s276_s14, 4  ;;  %s520_s22 = smul.u32 12, %s776_s9 }
  0x1b   : > { %s279_s20 = scalar_lea.vmem %s761_s5, %s519_s17  ;;  %s730_s21 = sadd.s32 %s521_s15, %s276_s14  ;;  %vm348_vm1 = vcmp.le.s32.totalorder %v343_v7, %v345_v8 }
  0x1c   : > { %v291_v0 = vld [vmem:[%s279_s20 + $0x8] sm:$0xff]  ;;  %v290_v1 = vld [vmem:[%s279_s20] sm:$0xff]  ;;  %s778_s13 = smov (!%p258_p7, %s255_s13), 11  ;;  %p268_p8 = scmp.lt.s32.totalorder %s265_s16, 11 }
  0x1d   : > { %310 = vmatpush.msra.mxu0 %v291_v0  ;;  %s261_s23 = sadd.s32 %s520_s22, %s778_s13  ;;  %s346_s9 = sld [smem:[#allocation5 + %s626_s0]] }
  0x1e   : > { %s509_s24 = sshll.u32 %s261_s23, 3  ;;  %s780_s16 = smov (!%p268_p8, %s265_s16), 11 }
  0x1f   : > { %311 = vmatpush.msra.mxu0 %v290_v1  ;;  %s263_s27 = scalar_lea.vmem %s759_s3, %s509_s24  ;;  %s271_s28 = sadd.s32 %s520_s22, %s780_s16 }
  0x20   : > { %v288_v2 = vld [vmem:[%s263_s27] sm:$0xff]  ;;  %s510_s29 = sshll.u32 %s271_s28, 3  ;;  %s513_s14 = sshll.u32 %s730_s21, 3 }
  0x21   : > { %514 = vmatmul.msk.f32.vlgmr.msra.gmra.mxu0 %vm292_vm0, %v288_v2  ;;  %s273_s8 = scalar_lea.vmem %s760_s4, %s510_s29  ;;  %s287_s17 = scalar_lea.vmem %s762_s6, %s513_s14 }
  0x22   : > { %v289_v3 = vld [vmem:[%s273_s8] sm:$0xff] }
  0x23   : > { %515 = vmatpush.xpose.msk.msra.mxu1 %vm292_vm0, %v289_v3  ;;  %p347_p9 = scmp.eq.s32.totalorder %s346_s9, 0 }
  0x25   : > { %s349_s13 = scalar_select %p347_p9, 1, 0 }
  0x27   : > { %v350_v9 = vstv %s349_s13 }
  0x28   : > { %vm351_vm2 = vcmp.eq.s32.totalorder %v350_v9, 1 }
  0x29   : > { %vm352_vm3 = vmor %vm351_vm2, %vm348_vm1 }
  0x9e   : > { %v313_v4 = vpop.f32.mrf.mxu0 }
  0x9f   : > { %516 = vmatmul.msk.f32.vlgmr.msra.gmra.mxu1 %vm292_vm0, %v313_v4 }
 0x11c   : > { %v339_v5 = vpop.f32.mrf.mxu1 }
 0x11d   : > { %353 = vxpose.xlu0.b32.start.end [1/1] (short) (narrow) %v339_v5, 8 }
 0x1c1   : > { %v369_v10 = vpop.trf.xlu0 }
 0x1c2   : > { %v385_v11 = vsel %vm352_vm3, %v339_v5, %v369_v10 }
 0x1c3   : > { %387 = vst.msk [vmem:[%s287_s17] sm:$0xff] %vm386_vm4, %v385_v11 }
 0x1c4 PF: > { %s34_s11 = sadd.s32 1, %s642_s11   ;;  %s765_s0 = smov %s634_s1 }
 0x1c5   : > { %p31_p10 = scmp.ge.s32.totalorder %s34_s11, 40   ;;  %s766_s9 = smov %s638_s10 }
 0x1c6   : > { %s767_s1 = smov %s770_s2  ;;  %s768_s10 = smov %s774_s12 }
 0x1c7   :  { %33 = sbr.rel (!%p31_p10) target bundleno = 12 (0xc), region = 68 }

</bundles_post_ra>
